<compile_context>
chip_gen: v7x
topology: tpu7x:2x2x1
jax: 0.10.0
libtpu: 0.0.40
codegen_flags: <defaults>
</compile_context>

<pallas_src>
import functools

import jax
import jax.numpy as jnp
from jax.experimental import pallas as pl
from jax.experimental.pallas import tpu as pltpu

_LANE = 128


# ----------------------------------------------------------------------------
# Kernels (pure elementwise; pe broadcasts over the batch/sublane dim)
# ----------------------------------------------------------------------------
def _pe_add_kernel(x_ref, pe_ref, o_ref):
    # eval path: dropout is identity (module.eval())
    o_ref[...] = (x_ref[...] + pe_ref[...]).astype(o_ref.dtype)


def _pe_add_dropout_kernel(x_ref, pe_ref, bits_ref, o_ref, *, inv_keep, threshold):
    # training path: keep iff bits >= p * 2^32  (bits uniform over [0, 2^32))
    y = x_ref[...] + pe_ref[...]
    keep = bits_ref[...] >= jnp.uint32(threshold)
    o_ref[...] = jnp.where(keep, y * inv_keep, jnp.zeros_like(y)).astype(o_ref.dtype)


# ----------------------------------------------------------------------------
# Tiling
# ----------------------------------------------------------------------------
def _choose_chunk(total_pad, batch, x_itemsize, training,
                  target_bytes=4 << 20, vmem_budget=40 << 20):
    """Pick the lane chunk (multiple of 128).

    Targets a ~`target_bytes` x tile (amortizes the ~0.35us per-grid-step cost,
    important on fast-HBM v7x), capped so the double-buffered x/out(/bits)
    tiles stay under `vmem_budget`, and guarantees >= 2 grid steps when the
    input is large enough (megacore split on v7x).
    """
    n_cols = total_pad // _LANE                                # 128-lane columns
    io_itemsize = 2 * x_itemsize + (4 if training else 0)      # x + out (+ bits)
    per_col_bytes = 2 * batch * _LANE * io_itemsize            # x2 double-buffer
    k_target = max(1, target_bytes // (batch * _LANE * x_itemsize))
    k_cap = max(1, vmem_budget // per_col_bytes)
    k = int(min(k_target, k_cap, n_cols))
    if k >= n_cols and n_cols >= 2:
        k = (n_cols + 1) // 2                                  # >= 2 grid steps
    return _LANE * k


# ----------------------------------------------------------------------------
# Wrapper
# ----------------------------------------------------------------------------
def learnable_positional_encoding(x, pe, *, dropout_p=0.1, training=False,
                                  rng_key=None, donate_x=False):
    """x: (B, L, D); pe: (L, D) learnable parameter; returns (B, L, D).

    Layout note: the whole batch sits on the sublane axis of every block; for
    B < 8 some vreg sublanes are padded, but the op stays HBM-bound so this is
    hidden in practice (callers with tiny batches + heavy dropout may prefer
    B a multiple of 8).
    """
    B, L, D = x.shape
    assert pe.shape == (L, D), "x + pe broadcast requires seq_len == max_len"
    assert 0.0 <= dropout_p < 1.0, "dropout_p must be in [0, 1)"

    use_dropout = bool(training) and dropout_p > 0.0
    total = L * D
    total_pad = ((total + _LANE - 1) // _LANE) * _LANE

    # Lane-dense layout: last dim is a large multiple of 128 (d_model is 16-64
    # in ConvTran, which would otherwise force masked vst.msk partial stores).
    x2 = x.reshape(B, total)
    pe2 = pe.reshape(1, total).astype(x.dtype)
    if total_pad != total:
        x2 = jnp.pad(x2, ((0, 0), (0, total_pad - total)))
        pe2 = jnp.pad(pe2, ((0, 0), (0, total_pad - total)))

    chunk = _choose_chunk(total_pad, B, x.dtype.itemsize, use_dropout)
    num_chunks = pl.cdiv(total_pad, chunk)

    # Explicit VMEM limit: double-buffered x + out (+ bits) tiles + pe + slack.
    tile_bytes = B * chunk * x.dtype.itemsize
    bits_bytes = B * chunk * 4 if use_dropout else 0
    vmem_usage = 2 * (2 * tile_bytes + bits_bytes) + 2 * chunk * pe2.dtype.itemsize
    vmem_limit = int(min(max(vmem_usage + (4 << 20), 16 << 20), 56 << 20))

    io_spec = pl.BlockSpec((B, chunk), lambda c: (0, c))
    pe_spec = pl.BlockSpec((1, chunk), lambda c: (0, c))

    if use_dropout:
        if rng_key is None:
            rng_key = jax.random.PRNGKey(0)
        # Randomness is a runtime operand (no seed baked into the trace), so
        # new seeds do not trigger Mosaic recompiles; the per-element dropout
        # decision still happens inside the kernel, fused with the add.
        # TODO(synk): on hardware, pltpu.prng_seed/prng_random_bits would avoid
        # this extra uint32 HBM read, but they do not lower in interpret mode.
        bits = jax.random.bits(rng_key, (B, total_pad), dtype=jnp.uint32)
        threshold = min(int(round(dropout_p * 4294967296.0)), 4294967295)
        kernel = functools.partial(_pe_add_dropout_kernel,
                                   inv_keep=1.0 / (1.0 - dropout_p),
                                   threshold=threshold)
        operands = (x2, pe2, bits)
        in_specs = [io_spec, pe_spec, io_spec]
    else:
        kernel = _pe_add_kernel
        operands = (x2, pe2)
        in_specs = [io_spec, pe_spec]

    out2 = pl.pallas_call(
        kernel,
        out_shape=jax.ShapeDtypeStruct((B, total_pad), x.dtype),
        grid_spec=pltpu.PrefetchScalarGridSpec(
            num_scalar_prefetch=0,
            grid=(num_chunks,),
            in_specs=in_specs,
            out_specs=io_spec,
        ),
        compiler_params=pltpu.CompilerParams(
            dimension_semantics=("parallel",),
            vmem_limit_bytes=vmem_limit,
        ),
        input_output_aliases=({0: 0} if donate_x else {}),
    )(*operands)

    if total_pad != total:
        out2 = out2[:, :total]
    return out2.reshape(B, L, D)


# ----------------------------------------------------------------------------
# Demo / self-test
# ----------------------------------------------------------------------------
if __name__ == "__main__":
    # small shapes: batch=2, seq_len (== max_len)=16, d_model=32
    B, L, D = 2, 16, 32
    key = jax.random.PRNGKey(0)
    kx, kpe, kdrop = jax.random.split(key, 3)
    x = jax.random.normal(kx, (B, L, D), dtype=jnp.float32)
    # learnable parameter, initialized like nn.init.uniform_(pe, -0.02, 0.02)
    pe = jax.random.uniform(kpe, (L, D), minval=-0.02, maxval=0.02,
                            dtype=jnp.float32)

    ref = x + pe[None]

    # eval-mode forward (dropout is identity, as in module.eval())
    out = learnable_positional_encoding(x, pe, dropout_p=0.1, training=False)
    out = jax.block_until_ready(out)
    assert out.shape == (B, L, D)
    assert out.dtype == x.dtype
    assert jnp.allclose(out, ref, atol=1e-6), "mismatch vs reference x + pe"

    # training-mode forward: every element must be 0 or (x+pe)/(1-p)
    # TODO(synk): dropout mask bits come from jax.random, so the stream differs
    # from torch's RNG (distributionally equivalent, not bit-identical).
    p = 0.1
    out_tr = learnable_positional_encoding(x, pe, dropout_p=p, training=True,
                                           rng_key=kdrop)
    out_tr = jax.block_until_ready(out_tr)
    scaled = ref / (1.0 - p)
    is_zero = jnp.abs(out_tr) <= 1e-6
    is_scaled = jnp.abs(out_tr - scaled) <= 1e-5
    assert bool(jnp.all(is_zero | is_scaled)), "dropout output not in {0, y/(1-p)}"
    drop_frac = float(jnp.mean(is_zero.astype(jnp.float32)))
    assert drop_frac < 0.5, f"dropout rate implausible: {drop_frac}"

    print("KERNEL_OK")
</pallas_src>

<mosaic_0001>
module attributes {stable_mosaic.version = 11 : i64} {
  func.func @_pe_add_kernel(%arg0: i32, %arg1: memref<2x256xf32, #tpu.memory_space<vmem>>, %arg2: memref<1x256xf32, #tpu.memory_space<vmem>>, %arg3: memref<2x256xf32, #tpu.memory_space<vmem>>) attributes {dimension_semantics = [#tpu.dimension_semantics<parallel>], iteration_bounds = array<i64: 2>, scalar_prefetch = 0 : i64, scratch_operands = 0 : i64, tpu.core_type = #tpu.core_type<tc>, window_params = [{transform_indices = @transform_0, window_bounds = array<i64: 2, 256>}, {transform_indices = @transform_1, window_bounds = array<i64: 1, 256>}, {transform_indices = @transform_2, window_bounds = array<i64: 2, 256>}]} {
    %c0 = arith.constant 0 : index
    %c0_0 = arith.constant 0 : index
    %0 = vector.load %arg1[%c0, %c0_0] : memref<2x256xf32, #tpu.memory_space<vmem>>, vector<2x256xf32>
    %c0_1 = arith.constant 0 : index
    %c0_2 = arith.constant 0 : index
    %1 = vector.load %arg2[%c0_1, %c0_2] : memref<1x256xf32, #tpu.memory_space<vmem>>, vector<1x256xf32>
    %2 = vector.broadcast %1 : vector<1x256xf32> to vector<2x256xf32>
    %3 = arith.addf %0, %2 : vector<2x256xf32>
    %c0_3 = arith.constant 0 : index
    %c0_4 = arith.constant 0 : index
    %4 = vector.load %arg3[%c0_3, %c0_4] : memref<2x256xf32, #tpu.memory_space<vmem>>, vector<2x256xf32>
    tpu.vector_store %arg3[%c0_3, %c0_4], %3 {strides = array<i32>} : memref<2x256xf32, #tpu.memory_space<vmem>>, vector<2x256xf32>,
    return
  }
  func.func @transform_0(%arg0: i32) -> (i32, i32) {
    %c0_i32 = arith.constant 0 : i32
    %c0_i32_0 = arith.constant 0 : i32
    return %c0_i32, %arg0 : i32, i32
  }
  func.func @transform_1(%arg0: i32) -> (i32, i32) {
    %c0_i32 = arith.constant 0 : i32
    %c0_i32_0 = arith.constant 0 : i32
    return %c0_i32, %arg0 : i32, i32
  }
  func.func @transform_2(%arg0: i32) -> (i32, i32) {
    %c0_i32 = arith.constant 0 : i32
    %c0_i32_0 = arith.constant 0 : i32
    return %c0_i32, %arg0 : i32, i32
  }
}

</mosaic_0001>

<bundles_post_ra>
// kernel: tpu_custom_call.1
= control target key start
LH: loop header
LB: loop body
LE: loop exit
PB: predicated region body
PF: predicated region fallthrough
CT: control target
= control target key end

     0   :  { %7 = vsyncpa [#allocation3], 0  ;;  %s759_s0 = inlined_call_operand.hbm [shape: f32[2,512], index: 0, kind: input, shape index: {}]   ;;  %s760_s1 = inlined_call_operand.hbm [shape: f32[1,512], index: 1, kind: input, shape index: {}]   ;;  %s761_s2 = inlined_call_operand.hbm [shape: f32[2,512], index: 2, kind: output, shape index: {}]  }
   0x1   :  { %9 = vsyncpa [#allocation3 + $0x1], 0 }
   0x2   :  { %10 = vsyncpa [#allocation6], 0 }
   0x3   :  { %12 = vsyncpa [#allocation6 + $0x1], 0 }
   0x4   :  { %13 = vsyncpa [#allocation4], 0 }
   0x5   :  { %15 = vsyncpa [#allocation4 + $0x1], 0  ;;  %s555_s9 = smov 0   ;;  %s557_s10 = smov 0  }
   0x6   :  { %s559_s11 = smov 0   ;;  %s561_s12 = smov 0  }
   0x7 LB: > { %s576_s13 = sadd.s32 4294967295, %s534_s12   ;;  %s331_s14 = sadd.s32 4294967294, %s534_s12   ;;  %s534_s12 = sphi %s561_s12, %s780_s12   ;;  %s530_s11 = sphi %s559_s11, %s779_s11   ;;  %s526_s10 = sphi %s557_s10, %s778_s10   ;;  %s522_s9 = sphi %s555_s9, %s777_s9  }
   0x8   : > { %s580_s15 = sadd.s32 1, %s534_s12   ;;  %s28_s16 = sadd.s32 1, %s530_s11 }
   0x9   : > { %s25_s17 = ssub.s32 %s534_s12, %s580_s15  ;;  %p35_p0 = scmp.ne.s32.totalorder %s530_s11, %s526_s10 }
   0xa   : > { %p26_p1 = scmp.eq.s32.totalorder %s25_s17, 0  ;;  %p36_p2 = scmp.eq.s32.totalorder %s534_s12, 0 }
   0xb   : > { %p41_p3 = scmp.ne.s32.totalorder %s526_s10, %s522_s9  ;;  %p42_p4 = scmp.eq.s32.totalorder %s576_s13, 0 }
   0xc   : > { %s592_s18 = scalar_select %p26_p1, %s530_s11, %s28_s16  }
   0xd   : > { %p594_p5 = por %p36_p2, %p35_p0  ;;  %p598_p6 = por %p42_p4, %p41_p3 }
   0xe   : > { %p91_p7 = scmp.eq.s32.totalorder %s576_s13, 1  ;;  %p97_p8 = scmp.eq.s32.totalorder %s331_s14, 1 }
   0xf   : > { %s765_s20 = scalar_select %p598_p6, 1, 0 }
  0x10   : > { %p369_p10 = scmp.lt.s32.totalorder %s534_s12, 2  ;;  %p605_p11 = por %p91_p7, %p35_p0 }
  0x11   : > { %p609_p12 = por %p97_p8, %p41_p3  ;;  %s614_s23 = sand.u32 1, %s530_s11  }
  0x12   : > { %s766_s21 = scalar_select %p605_p11, 1, 0 }
  0x13   : > { %s767_s22 = scalar_select %p609_p12, 1, 0 }
  0x14   : > { %s349_s24 = sshll.u32 %s534_s12, 6  ;;  %s334_s25 = sshll.u32 %s614_s23, 2 }
  0x15   : > { %s621_s28 = scalar_lea.hbm %s759_s0, %s349_s24  ;;  %s121_s29 = scalar_lea.vmem [#allocation2], %s334_s25 }
  0x16   : > { %s129_s30 = sshll.u32 %s121_s29, 4  ;;  %p625_p13 = pnand %p369_p10, %p594_p5  ;;  %s629_s30 = int_to_ptr.vmem [resolvable:$true] %s129_s30 }
  0x17   : > { %s118_s4 = scalar_lea.sflag [#allocation3], %s614_s23  ;;  %s404_s5 = scalar_lea.hbm %s621_s28, 64 }
  0x18   : > { %p405_p2 = scmp.ne.s32.totalorder %s621_s28, %s404_s5  ;;  %p406_p3 = pneg %p625_p13 }
  0x19   : > { %s409_s8 = scalar_lea.hbm %s759_s0, 128  ;;  %p410_p5 = scmp.lt.u32.totalorder %s621_s28, %s759_s0 }
  0x1a   : > { %p407_p4 = pnand %p406_p3, %p405_p2  ;;  %p411_p8 = scmp.lt.u32.totalorder %s409_s8, %s404_s5 }
  0x1b   : > { %p413_p9 = scmp.lt.u32.totalorder %s404_s5, %s621_s28 }
  0x1c   : > { %p408_p7 = pneg %p407_p4  ;;  %p412_p10 = por %p411_p8, %p410_p5 }
  0x1e   : > { %p414_p0 = por %p413_p9, %p412_p10 }
  0x20   : > { %p415_p1 = pnand %p414_p0, %p408_p7 }
  0x22   : > { %418 = shalt.err (!%p415_p1)
}
  0x23   : > { %s419_s17 = scalar_lea.vmem %s629_s30, 64  ;;  %s536_s19 = smov [#allocation2]  }
  0x24   : > { %p420_p2 = scmp.ne.s32.totalorder %s629_s30, %s419_s17  ;;  %s424_s24 = sshll.u32 %s536_s19, 4  ;;  %s425_s24 = int_to_ptr.vmem [resolvable:$false] %s424_s24 }
  0x25   : > { %s426_s25 = scalar_lea.vmem %s425_s24, 128  ;;  %p427_p11 = scmp.lt.s32.totalorder %s629_s30, %s425_s24 }
  0x26   : > { %p422_p4 = pnand %p420_p2, %p406_p3  ;;  %p428_p5 = scmp.lt.s32.totalorder %s426_s25, %s419_s17 }
  0x28   : > { %p423_p12 = pneg %p422_p4  ;;  %p429_p8 = por %p428_p5, %p427_p11 }
  0x2a   : > { %p430_p9 = pnand %p429_p8, %p423_p12 }
  0x2c   : > { %433 = shalt.err (!%p430_p9)
}
  0x2d   : > { %361 = dma.hbm_to_vmem [thread:$0]  (!%p625_p13), %s621_s28, 64, %s629_s30, %s118_s4  }
  0x2e   : > { %p769_p0 = scmp.lt.s32.totalorder %s534_s12, 3  ;;  %p770_p1 = scmp.ge.s32.totalorder %s534_s12, 1 }
  0x2f   : > { %s337_s27 = sshll.u32 %s614_s23, 1  ;;  %s350_s29 = sshll.u32 %s534_s12, 5 }
  0x30   : > { %p663_p7 = pnand %p770_p1, %p769_p0  ;;  %s672_s7 = scalar_lea.hbm %s760_s1, %s350_s29 }
  0x31   : > { %s140_s8 = scalar_lea.vmem [#allocation5], %s337_s27  ;;  %s137_s28 = scalar_lea.sflag [#allocation6], %s614_s23 }
  0x32   : > { %s771_s26 = scalar_select %p663_p7, 1, 0 }
  0x33   : > { %s148_s14 = sshll.u32 %s140_s8, 4  ;;  %s434_s30 = scalar_lea.hbm %s672_s7, 32  ;;  %s149_s14 = int_to_ptr.vmem [resolvable:$true] %s148_s14 }
  0x34   : > { %p435_p11 = scmp.ne.s32.totalorder %s672_s7, %s434_s30  ;;  %s439_s17 = scalar_lea.hbm %s760_s1, 64 }
  0x35   : > { %p440_p2 = scmp.lt.u32.totalorder %s672_s7, %s760_s1  ;;  %p441_p4 = scmp.lt.u32.totalorder %s439_s17, %s434_s30 }
  0x36   : > { %p437_p12 = pnand %p435_p11, %p406_p3  ;;  %p443_p8 = scmp.lt.u32.totalorder %s434_s30, %s672_s7 }
  0x37   : > { %p442_p5 = por %p441_p4, %p440_p2 }
  0x38   : > { %p438_p10 = pneg %p437_p12 }
  0x39   : > { %p444_p9 = por %p443_p8, %p442_p5 }
  0x3b   : > { %p445_p0 = pnand %p444_p9, %p438_p10 }
  0x3d   : > { %448 = shalt.err (!%p445_p0)
}
  0x3e   : > { %s449_s23 = scalar_lea.vmem %s149_s14, 32  ;;  %s537_s25 = smov [#allocation5]  }
  0x3f   : > { %p450_p1 = scmp.ne.s32.totalorder %s149_s14, %s449_s23  ;;  %s454_s27 = sshll.u32 %s537_s25, 4  ;;  %s455_s27 = int_to_ptr.vmem [resolvable:$false] %s454_s27 }
  0x40   : > { %s456_s29 = scalar_lea.vmem %s455_s27, 64  ;;  %p457_p6 = scmp.lt.s32.totalorder %s149_s14, %s455_s27 }
  0x41   : > { %p452_p11 = pnand %p450_p1, %p406_p3  ;;  %p458_p7 = scmp.lt.s32.totalorder %s456_s29, %s449_s23 }
  0x43   : > { %p453_p12 = pneg %p452_p11  ;;  %p459_p2 = por %p458_p7, %p457_p6 }
  0x45   : > { %p460_p4 = pnand %p459_p2, %p453_p12 }
  0x47   : > { %463 = shalt.err (!%p460_p4)
}
  0x48   : > { %364 = dma.hbm_to_vmem [thread:$0]  (!%p625_p13), %s672_s7, 32, %s149_s14, %s137_s28  }
  0x49   : > { %p772_p10 = scmp.ne.s32.totalorder %s771_s26, 0 }
  0x4a   : > { %s697_s5 = sand.u32 (!%p772_p10), 1, %s526_s10   ;;  %p773_p3 = scmp.ne.s32.totalorder (!%p772_p10), %s765_s20, 0 }
  0x4b   : > { %157 = sbr.rel (%p772_p10) target bundleno = 114 (0x72), region = 28  ;;  %s341_s6 = sshll.u32 (!%p772_p10), %s697_s5, 2 }
  0x4c   : > { %s160_s8 = scalar_lea.sflag (!%p772_p10), [#allocation3], %s697_s5  ;;  %s163_s30 = scalar_lea.vmem (!%p772_p10), [#allocation2], %s341_s6 }
  0x52   : > { %509 = dma.done.wait (%p773_p3), %s160_s8, 64  }
  0x53   : > { %511 = vsyncadd (%p773_p3), %s160_s8, 4294967232  ;;  %s342_s3 = sshll.u32 %s697_s5, 1  ;;  %s169_s26 = scalar_lea.sflag [#allocation6], %s697_s5 }
  0x54   : > { %s172_s7 = scalar_lea.vmem [#allocation5], %s342_s3 }
  0x55   : > { %513 = dma.done.wait (%p773_p3), %s169_s26, 32  }
  0x56   : > { %515 = vsyncadd (%p773_p3), %s169_s26, 4294967264  ;;  %v204_v0 = vlaneseq  ;;  %v538_v1 = vmov 1983009808   ;;  %v202_v7 = vld [vmem:[%s172_s7] sm:$0x3]  ;;  %s197_s14 = scalar_lea.vmem [#allocation7], %s341_s6 }
  0x57   : > { %v214_v2 = vunpack.c.l.s4 %v538_v1  ;;  %v201_v12 = vld [vmem:[%s163_s30] sm:$0xf]  ;;  %s238_s28 = sshll.u32 %s197_s14, 4  ;;  %s351_s20 = sshll.u32 %s576_s13, 6  ;;  %s712_s28 = int_to_ptr.vmem [resolvable:$true] %s238_s28 }
  0x58   : > { %v205_v3 = vshrl.u32 %v204_v0, 7  ;;  %s717_s17 = scalar_lea.hbm %s761_s2, %s351_s20  ;;  %s224_s19 = scalar_lea.sflag [#allocation4], %s697_s5 }
  0x59   : > { %v215_v6 = vunpack.c.0.s8 %v214_v2  ;;  %s464_s24 = scalar_lea.vmem %s712_s28, 64  ;;  %p774_p13 = scmp.ne.s32.totalorder %s766_s21, 0 }
  0x5a   : > { %v206_v4 = vsub.s32 0, %v205_v3  ;;  %v210_v5 = vsub.s32 1, %v205_v3  ;;  %p465_p6 = scmp.ne.s32.totalorder %s712_s28, %s464_s24  ;;  %s539_s13 = smov [#allocation7]  }
  0x5b   : > { %v218_v10 = vsub.s32 %v215_v6, %v205_v3  ;;  %s468_s23 = sshll.u32 %s539_s13, 4  ;;  %s469_s23 = int_to_ptr.vmem [resolvable:$false] %s468_s23 }
  0x5c   : > { %v207_v8 = vrot.slane %v202_v7, %v206_v4  ;;  %v211_v9 = vrot.slane %v202_v7, %v210_v5  ;;  %p466_p7 = pnand %p465_p6, %p774_p13  ;;  %s470_s25 = scalar_lea.vmem %s469_s23, 128 }
  0x5d   : > { %p471_p8 = scmp.lt.s32.totalorder %s712_s28, %s469_s23  ;;  %p472_p9 = scmp.lt.s32.totalorder %s470_s25, %s464_s24 }
  0x5e   : > { %v212_v11 = vcombine.low %v207_v8, %v211_v9  ;;  %p467_p5 = pneg %p466_p7 }
  0x5f   : > { %p473_p0 = por %p472_p9, %p471_p8 }
  0x60   : > { %v219_v13 = vrot.slane %v212_v11, %v218_v10 }
  0x61   : > { %p474_p1 = pnand %p473_p0, %p467_p5 }
  0x62   : > { %v221_v14 = vadd.f32 %v219_v13, %v201_v12 }
  0x64   : > { %222 = vst [vmem:[%s197_s14] sm:$0xf] %v221_v14 }
  0x65   : > { %477 = shalt.err (!%p474_p1)
}
  0x66   : > { %s478_s27 = scalar_lea.hbm %s717_s17, 64  ;;  %s482_s6 = scalar_lea.hbm %s761_s2, 128 }
  0x67   : > { %p479_p11 = scmp.ne.s32.totalorder %s717_s17, %s478_s27  ;;  %p483_p4 = scmp.lt.u32.totalorder %s717_s17, %s761_s2 }
  0x68   : > { %p484_p10 = scmp.lt.u32.totalorder %s482_s6, %s478_s27  ;;  %p486_p6 = scmp.lt.u32.totalorder %s478_s27, %s717_s17 }
  0x69   : > { %p480_p12 = pnand %p479_p11, %p774_p13 }
  0x6a   : > { %p485_p3 = por %p484_p10, %p483_p4 }
  0x6b   : > { %p481_p2 = pneg %p480_p12 }
  0x6c   : > { %p487_p7 = por %p486_p6, %p485_p3 }
  0x6e   : > { %p488_p5 = pnand %p487_p7, %p481_p2 }
  0x70   : > { %491 = shalt.err (!%p488_p5)
}
  0x71   : > { %356 = dma.vmem_to_hbm [thread:$0]  (%p774_p13), %s712_s28, 64, %s717_s17, %s224_s19  }
  0x72 PF: > { %s250_s3 = sand.u32 1, %s522_s9   ;;  %p775_p8 = scmp.ne.s32.totalorder %s767_s22, 0 }
  0x73   : > { %p776_p9 = scmp.ge.s32.totalorder %s534_s12, 2  ;;  %s251_s26 = scalar_lea.sflag [#allocation4], %s250_s3 }
  0x75   : > { %p366_p0 = pnand %p776_p9, %p775_p8 }
  0x77   : > { %517 = dma.done.wait (!%p366_p0), %s251_s26, 64  }
  0x78   : > { %519 = vsyncadd (!%p366_p0), %s251_s26, 4294967232  ;;  %p18_p1 = scmp.ge.s32.totalorder %s580_s15, 4   ;;  %s777_s9 = smov %s526_s10 }
  0x79   : > { %s778_s10 = smov %s530_s11  ;;  %s779_s11 = smov %s592_s18 }
  0x7a   : > { %s780_s12 = smov %s580_s15  ;;  %20 = sbr.rel (!%p18_p1) target bundleno = 7 (0x7), region = 86 }
  0x81   :  { %256 = vsyncpa [#allocation3], 1 }
  0x82   :  { %258 = vsyncpa [#allocation3 + $0x1], 1 }
  0x83   :  { %259 = vsyncpa [#allocation6], 1 }
  0x84   :  { %261 = vsyncpa [#allocation6 + $0x1], 1 }
  0x85   :  { %262 = vsyncpa [#allocation4], 1 }
  0x86   :  { %264 = vsyncpa [#allocation4 + $0x1], 1 }

</bundles_post_ra>
